<compile_context>
chip_gen: v7x
topology: tpu7x:2x2x1
jax: 0.10.0
libtpu: 0.0.40
codegen_flags: <defaults>
</compile_context>

<pallas_src>
import jax
import jax.numpy as jnp
from jax.experimental import pallas as pl
from jax.experimental.pallas import tpu as pltpu

_EPS = 1e-8


def _round_up(x: int, m: int) -> int:
    return ((x + m - 1) // m) * m


def _mse_partial_kernel(u_ref, v_ref, out_ref, acc_ref):
    """Accumulate sum(((u+eps)-(v+eps))^2) per row; emit (TB, 1) row sums."""
    k = pl.program_id(1)

    @pl.when(k == 0)
    def _init():
        acc_ref[...] = jnp.zeros_like(acc_ref)

    # Hot loop: pure elementwise VPU work (no cross-lane ops here).
    u = u_ref[...].astype(jnp.float32) + _EPS
    v = v_ref[...].astype(jnp.float32) + _EPS
    d = u - v
    acc_ref[...] += d * d

    @pl.when(k == pl.num_programs(1) - 1)
    def _finalize():
        # One cross-lane (XLU) reduce per row tile, epilogue only.
        out_ref[...] = jnp.sum(acc_ref[...], axis=-1, keepdims=True)


def mse_pallas(pr, gt, *, tile_rows: int = 256, tile_cols: int = 2048,
               max_col_tiles: int = 4):
    """nn.MSELoss(reduction='mean')(pr + 1e-8, gt + 1e-8), Pallas-backed."""
    assert pr.shape == gt.shape, "pr and gt must have the same shape"
    assert pr.dtype == gt.dtype, "pr and gt must have the same dtype"
    assert tile_rows % 8 == 0 and tile_cols % 128 == 0

    n_true = pr.size
    p = pr.reshape(-1)
    g = gt.reshape(-1)
    T = max(int(p.size), 1)

    # ---- choose a lane-dense (R_pad, C) layout and tile sizes -------------
    if T <= tile_cols:
        tc = _round_up(T, 128)            # single minimal column tile
        C = tc
    else:
        tc = tile_cols
        n_ct = max(1, min(max_col_tiles, T // (tile_rows * tile_cols)))
        C = n_ct * tc                     # multi-tile reduction axis

    T_pad = _round_up(T, C)
    R = T_pad // C
    if R <= tile_rows:
        tb = R                            # block spans full row dim (allowed)
        R_pad = R
    else:
        tb = tile_rows
        R_pad = _round_up(R, tb)
        T_pad = R_pad * C

    pad = T_pad - int(p.size)
    if pad:
        # Zero padding in BOTH operands contributes exactly 0 to the sum.
        p = jnp.pad(p, (0, pad))
        g = jnp.pad(g, (0, pad))
    p2 = p.reshape(R_pad, C)
    g2 = g.reshape(R_pad, C)

    grid = (R_pad // tb, C // tc)
    itemsize = jnp.dtype(pr.dtype).itemsize

    row_sums = pl.pallas_call(
        _mse_partial_kernel,
        out_shape=jax.ShapeDtypeStruct((R_pad, 1), jnp.float32),
        grid_spec=pltpu.PrefetchScalarGridSpec(
            num_scalar_prefetch=0,
            grid=grid,
            in_specs=[
                pl.BlockSpec((tb, tc), lambda i, k: (i, k)),
                pl.BlockSpec((tb, tc), lambda i, k: (i, k)),
            ],
            out_specs=pl.BlockSpec((tb, 1), lambda i, k: (i, 0)),
            scratch_shapes=[pltpu.VMEM((tb, tc), jnp.float32)],
        ),
        compiler_params=pltpu.CompilerParams(
            dimension_semantics=("parallel", "arbitrary"),
            vmem_limit_bytes=32 * 1024 * 1024,
        ),
        cost_estimate=pl.CostEstimate(
            flops=5 * T_pad,
            transcendentals=0,
            bytes_accessed=2 * T_pad * itemsize + R_pad * 4,
        ),
    )(p2, g2)

    # Tiny final reduction + mean over the TRUE (unpadded) element count.
    return jnp.sum(row_sums) / jnp.float32(n_true)


class MSE:
    """Port of the reference `mse` module (nn.MSELoss, mean reduction)."""

    def __init__(self) -> None:
        pass

    # TODO(synk): reference `custom()` calls torch.abs(pr, gt) (invalid torch
    # usage, result discarded) — intentionally not ported.

    def forward(self, pr, gt):
        return mse_pallas(pr, gt)

    def __call__(self, pr, gt):
        return self.forward(pr, gt)


if __name__ == "__main__":
    key = jax.random.PRNGKey(0)
    k1, k2, k3, k4 = jax.random.split(key, 4)

    # Small forecasting-metric-style shapes: (batch, channels, seq).
    B, Cc, S = 2, 4, 16
    pr = jax.random.normal(k1, (B, Cc, S), dtype=jnp.float32)
    gt = jax.random.normal(k2, (B, Cc, S), dtype=jnp.float32)

    mod = MSE()
    out = jax.block_until_ready(mod(pr, gt))
    ref = jnp.mean(((pr + _EPS) - (gt + _EPS)) ** 2)
    assert jnp.allclose(out, ref, rtol=1e-5, atol=1e-6), (out, ref)

    # Exercise the 2-D (row-parallel, column-reduction) grid with tiny tiles
    # so the accumulator init/finalize logic runs across multiple k steps.
    pr2 = jax.random.normal(k3, (8, 4, 128), dtype=jnp.float32)
    gt2 = jax.random.normal(k4, (8, 4, 128), dtype=jnp.float32)
    out2 = jax.block_until_ready(
        mse_pallas(pr2, gt2, tile_rows=8, tile_cols=128))
    ref2 = jnp.mean(((pr2 + _EPS) - (gt2 + _EPS)) ** 2)
    assert jnp.allclose(out2, ref2, rtol=1e-5, atol=1e-6), (out2, ref2)

    # bf16 inputs stream at native width (upcast happens in-kernel only).
    out3 = jax.block_until_ready(
        mse_pallas(pr.astype(jnp.bfloat16), gt.astype(jnp.bfloat16)))
    ref3 = jnp.mean(
        (pr.astype(jnp.bfloat16).astype(jnp.float32)
         - gt.astype(jnp.bfloat16).astype(jnp.float32)) ** 2)
    assert jnp.allclose(out3, ref3, rtol=2e-2, atol=2e-2), (out3, ref3)

    print("KERNEL_OK")
</pallas_src>

<mosaic_0001>
module attributes {stable_mosaic.version = 11 : i64} {
  func.func @_mse_partial_kernel(%arg0: i32, %arg1: i32, %arg2: memref<1x128xf32, #tpu.memory_space<vmem>>, %arg3: memref<1x128xf32, #tpu.memory_space<vmem>>, %arg4: memref<1x1xf32, #tpu.memory_space<vmem>>, %arg5: memref<1x128xf32, #tpu.memory_space<vmem>>) attributes {dimension_semantics = [#tpu.dimension_semantics<parallel>, #tpu.dimension_semantics<arbitrary>], iteration_bounds = array<i64: 1, 1>, scalar_prefetch = 0 : i64, scratch_operands = 1 : i64, tpu.core_type = #tpu.core_type<tc>, window_params = [{transform_indices = @transform_0, window_bounds = array<i64: 1, 128>}, {transform_indices = @transform_1, window_bounds = array<i64: 1, 128>}, {transform_indices = @transform_2, window_bounds = array<i64: 1, 1>}]} {
    %c0_i32 = arith.constant 0 : i32
    %0 = arith.cmpi eq, %arg1, %c0_i32 : i32
    %1 = arith.extui %0 : i1 to i32
    %c0_i32_0 = arith.constant 0 : i32
    %2 = arith.cmpi ne, %1, %c0_i32_0 : i32
    scf.if %2 {
      %cst_11 = arith.constant 0.000000e+00 : f32
      %17 = vector.broadcast %cst_11 : f32 to vector<1x128xf32>
      %c0_12 = arith.constant 0 : index
      %c0_13 = arith.constant 0 : index
      %18 = vector.load %arg5[%c0_12, %c0_13] : memref<1x128xf32, #tpu.memory_space<vmem>>, vector<1x128xf32>
      tpu.vector_store %arg5[%c0_12, %c0_13], %17 {strides = array<i32>} : memref<1x128xf32, #tpu.memory_space<vmem>>, vector<1x128xf32>,
    } else {
    }
    %c0 = arith.constant 0 : index
    %c0_1 = arith.constant 0 : index
    %3 = vector.load %arg2[%c0, %c0_1] : memref<1x128xf32, #tpu.memory_space<vmem>>, vector<1x128xf32>
    %cst = arith.constant 9.99999993E-9 : f32
    %4 = vector.broadcast %cst : f32 to vector<1x128xf32>
    %5 = arith.addf %3, %4 : vector<1x128xf32>
    %c0_2 = arith.constant 0 : index
    %c0_3 = arith.constant 0 : index
    %6 = vector.load %arg3[%c0_2, %c0_3] : memref<1x128xf32, #tpu.memory_space<vmem>>, vector<1x128xf32>
    %cst_4 = arith.constant 9.99999993E-9 : f32
    %7 = vector.broadcast %cst_4 : f32 to vector<1x128xf32>
    %8 = arith.addf %6, %7 : vector<1x128xf32>
    %9 = arith.subf %5, %8 : vector<1x128xf32>
    %c0_5 = arith.constant 0 : index
    %c0_6 = arith.constant 0 : index
    %10 = vector.load %arg5[%c0_5, %c0_6] : memref<1x128xf32, #tpu.memory_space<vmem>>, vector<1x128xf32>
    %11 = arith.mulf %9, %9 : vector<1x128xf32>
    %12 = arith.addf %10, %11 : vector<1x128xf32>
    %c0_7 = arith.constant 0 : index
    %c0_8 = arith.constant 0 : index
    %13 = vector.load %arg5[%c0_7, %c0_8] : memref<1x128xf32, #tpu.memory_space<vmem>>, vector<1x128xf32>
    tpu.vector_store %arg5[%c0_7, %c0_8], %12 {strides = array<i32>} : memref<1x128xf32, #tpu.memory_space<vmem>>, vector<1x128xf32>,
    %c0_i32_9 = arith.constant 0 : i32
    %14 = arith.cmpi eq, %arg1, %c0_i32_9 : i32
    %15 = arith.extui %14 : i1 to i32
    %c0_i32_10 = arith.constant 0 : i32
    %16 = arith.cmpi ne, %15, %c0_i32_10 : i32
    scf.if %16 {
      %c0_11 = arith.constant 0 : index
      %c0_12 = arith.constant 0 : index
      %17 = vector.load %arg5[%c0_11, %c0_12] : memref<1x128xf32, #tpu.memory_space<vmem>>, vector<1x128xf32>
      %cst_13 = arith.constant dense<0.000000e+00> : vector<1xf32>
      %18 = vector.multi_reduction <add>, %17, %cst_13 [1] : vector<1x128xf32> to vector<1xf32>
      %19 = vector.shape_cast %18 : vector<1xf32> to vector<1x1xf32>
      %c0_14 = arith.constant 0 : index
      %c0_15 = arith.constant 0 : index
      %20 = vector.load %arg4[%c0_14, %c0_15] : memref<1x1xf32, #tpu.memory_space<vmem>>, vector<1x1xf32>
      tpu.vector_store %arg4[%c0_14, %c0_15], %19 {strides = array<i32>} : memref<1x1xf32, #tpu.memory_space<vmem>>, vector<1x1xf32>,
    } else {
    }
    return
  }
  func.func @transform_0(%arg0: i32, %arg1: i32) -> (i32, i32) {
    %c0_i32 = arith.constant 0 : i32
    return %arg0, %arg1 : i32, i32
  }
  func.func @transform_1(%arg0: i32, %arg1: i32) -> (i32, i32) {
    %c0_i32 = arith.constant 0 : i32
    return %arg0, %arg1 : i32, i32
  }
  func.func @transform_2(%arg0: i32, %arg1: i32) -> (i32, i32) {
    %c0_i32 = arith.constant 0 : i32
    %c0_i32_0 = arith.constant 0 : i32
    return %arg0, %c0_i32 : i32, i32
  }
}

</mosaic_0001>

<bundles_post_ra>
// kernel: tpu_custom_call.1
= control target key start
LH: loop header
LB: loop body
LE: loop exit
PB: predicated region body
PF: predicated region fallthrough
CT: control target
= control target key end

     0   :  { %7 = vsyncpa [#allocation4], 0  ;;  %s159_s0 = inlined_call_operand.hbm [shape: f32[1,128], index: 0, kind: input, shape index: {}]   ;;  %s160_s1 = inlined_call_operand.vmem [shape: f32[1,128], index: 1, kind: input, shape index: {}]   ;;  %s161_s2 = inlined_call_operand.hbm [shape: f32[1,1], index: 2, kind: output, shape index: {}]  }
   0x1   :  { %8 = vsyncpa [#allocation5], 0  ;;  %s114_s9 = smov [#allocation3]   ;;  %s66_s13 = scalar_lea.hbm %s159_s0, 16 }
   0x2   :  { %s15_s10 = sshll.u32 %s114_s9, 4  ;;  %p67_p0 = scmp.ne.s32.totalorder %s159_s0, %s66_s13  ;;  %s16_s10 = int_to_ptr.vmem [resolvable:$true] %s15_s10 }
   0x3   :  { %p70_p1 = scmp.lt.u32.totalorder %s66_s13, %s159_s0 }
   0x5   :  { %p72_p2 = pnand %p70_p1, %p67_p0 }
   0x7   :  { %75 = shalt.err (!%p72_p2)
}
   0x8   :  { %s76_s18 = scalar_lea.vmem %s16_s10, 16  ;;  %s80_s19 = scalar_lea.vmem %s16_s10, 32 }
   0x9   :  { %p77_p3 = scmp.ne.s32.totalorder %s16_s10, %s76_s18  ;;  %p81_p4 = scmp.lt.s32.totalorder %s16_s10, %s16_s10 }
   0xa   :  { %p82_p5 = scmp.lt.s32.totalorder %s80_s19, %s76_s18 }
   0xc   :  { %p83_p6 = por %p82_p5, %p81_p4 }
   0xe   :  { %p84_p7 = pnand %p83_p6, %p77_p3 }
  0x10   :  { %87 = shalt.err (!%p84_p7)
}
  0x11   :  { %18 = dma.hbm_to_vmem [thread:$0]  %s159_s0, 16, %s16_s10, [#allocation4]  }
  0x12   :  { %110 = dma.done.wait [#allocation4], 16  }
  0x13   :  { %111 = vsyncadd [#allocation4], 4294967280  ;;  %v115_v0 = vmov 0.0   ;;  %v29_v1 = vld [vmem:[#allocation3] sm:$0x1]  ;;  %vm42_vm0 = vcmask 1040384  }
  0x14   :  { %28 = vst [vmem:[#allocation2] sm:$0x1] %v115_v0  ;;  %v31_v2 = vld [vmem:[%s160_s1] sm:$0x1]  ;;  %v30_v3 = vadd.f32 1e-08, %v29_v1 }
  0x15   :  { %v32_v4 = vadd.f32 1e-08, %v31_v2  ;;  %s116_s0 = smov [#allocation6]   ;;  %vm46_vm1 = vcmask 0  }
  0x16   :  { %s54_s24 = sshll.u32 %s116_s0, 4  ;;  %s55_s24 = int_to_ptr.vmem [resolvable:$true] %s54_s24 }
  0x17   :  { %v33_v5 = vsub.f32 %v30_v3, %v32_v4  ;;  %s88_s25 = scalar_lea.vmem %s55_s24, 16  ;;  %s92_s1 = scalar_lea.vmem %s55_s24, 32 }
  0x18   :  { %p89_p8 = scmp.ne.s32.totalorder %s55_s24, %s88_s25  ;;  %p93_p9 = scmp.lt.s32.totalorder %s55_s24, %s55_s24 }
  0x19   :  { %v35_v7 = vmul.f32 %v33_v5, %v33_v5  ;;  %p94_p10 = scmp.lt.s32.totalorder %s92_s1, %s88_s25 }
  0x1b   :  { %v34_v6 = vld [vmem:[#allocation2] sm:$0x1]  ;;  %p95_p11 = por %p94_p10, %p93_p9 }
  0x1c   :  { %v36_v8 = vadd.f32 %v35_v7, %v34_v6 }
  0x1d   :  { %p96_p12 = pnand %p95_p11, %p89_p8 }
  0x1e   :  { %37 = vst [vmem:[#allocation2] sm:$0x1] %v36_v8 }
  0x25   :  { %v41_v9 = vld [vmem:[#allocation2] sm:$0x1] }
  0x26   :  { %v43_v10 = vsel %vm42_vm0, %v41_v9, 0.0 }
  0x27   :  { %44 = vadd.xlane.f32.xlu0 %v43_v10 }
  0xb4   :  { %v45_v11 = vpop.xlane.xlu0 %44 }
  0xb5   :  { %47 = vst.msk [vmem:[#allocation6] sm:$0x1] %vm46_vm1, %v45_v11 }
  0xb6   :  { %99 = shalt.err (!%p96_p12)
}
  0xb7   :  { %s100_s28 = scalar_lea.hbm %s161_s2, 16 }
  0xb8   :  { %p101_p13 = scmp.ne.s32.totalorder %s161_s2, %s100_s28  ;;  %p104_p0 = scmp.lt.u32.totalorder %s100_s28, %s161_s2 }
  0xba   :  { %p106_p1 = pnand %p104_p0, %p101_p13 }
  0xbc   :  { %109 = shalt.err (!%p106_p1)
}
  0xbd   :  { %57 = dma.vmem_to_hbm [thread:$0]  %s55_s24, 16, %s161_s2, [#allocation5]  }
  0xbe   :  { %112 = dma.done.wait [#allocation5], 16  }
  0xbf   :  { %113 = vsyncadd [#allocation5], 4294967280 }
  0xc0   :  { %61 = vsyncpa [#allocation4], 1 }
  0xc1   :  { %62 = vsyncpa [#allocation5], 1 }

</bundles_post_ra>
